<compile_context>
chip_gen: v7x
topology: tpu7x:2x2x1
jax: 0.10.0
libtpu: 0.0.40
codegen_flags: <defaults>
</compile_context>

<pallas_src>
import math

import numpy as np
import jax
import jax.numpy as jnp
from jax.experimental import pallas as pl
from jax.experimental.pallas import tpu as pltpu  # noqa: F401  (TPU backend)


# ---------------------------------------------------------------------------
# Problem sizes (consistent with the module: embed_dim=32, num_heads=4)
# ---------------------------------------------------------------------------
B = 2          # batch
LQ = 8         # query sequence length
LK = 8         # key/value sequence length
E = 32         # embed_dim
H = 4          # num_heads
DH = E // H    # head_dim
FFN = 4 * E    # ffn hidden dim
LN_EPS = 1e-5

NQ = B * LQ    # flattened query rows
NK = B * LK    # flattened key/value rows

# ---------------------------------------------------------------------------
# Packed parameter-slab layout (rows x 128 lanes, f32)
# ---------------------------------------------------------------------------
LANES = 128
R_WQKV = 0                  # rows [0, E)        lanes [0, 3E)   : [Wq*s | Wk | Wv]
R_WO = E                    # rows [E, 2E)       lanes [0, E)    : Wo
R_W1 = 2 * E                # rows [2E, 3E)      lanes [0, FFN)  : W1
R_W2 = 3 * E                # rows [3E, 3E+FFN)  lanes [0, E)    : W2
R_HMASK = 3 * E + FFN       # rows [.., +H*NQ)   lanes [0, E)    : head-selector 0/1 mask
R_BMASK = R_HMASK + H * NQ  # rows [.., +H*NQ)   lanes [0, NK)   : additive cross-batch mask
R_VEC = R_BMASK + H * NQ    # 8 single-row vectors
V_BQKV, V_B1, V_BO, V_G1, V_BE1, V_G2, V_BE2, V_B2 = range(8)
N_ROWS = R_VEC + 8


def cross_attention_kernel(xq_ref, xk_ref, xv_ref, p_ref, out_ref):
    x_q = xq_ref[...]                                              # (NQ, E)

    # --- fused QKV projection (Wq/bq already carry 1/sqrt(DH)) -------------
    x_all = jnp.concatenate([x_q, xk_ref[...], xv_ref[...]], axis=0)   # (NQ+2NK, E)
    w_qkv = p_ref[R_WQKV:R_WQKV + E, 0:3 * E]                          # (E, 3E)
    b_qkv = p_ref[R_VEC + V_BQKV:R_VEC + V_BQKV + 1, 0:3 * E]          # (1, 3E)
    proj = jnp.dot(x_all, w_qkv, preferred_element_type=jnp.float32) + b_qkv
    q = proj[0:NQ, 0:E]                                                # (NQ, E)  (scaled)
    k = proj[NQ:NQ + NK, E:2 * E]                                      # (NK, E)
    v = proj[NQ + NK:NQ + 2 * NK, 2 * E:3 * E]                         # (NK, E)

    # --- attention: heads stacked along rows (block-diagonal Q) ------------
    head_mask = p_ref[R_HMASK:R_HMASK + H * NQ, 0:E]                   # (H*NQ, E) 0/1
    add_mask = p_ref[R_BMASK:R_BMASK + H * NQ, 0:NK]                   # (H*NQ, NK) additive

    q_bd = jnp.concatenate([q] * H, axis=0) * head_mask                # (H*NQ, E)
    s = jnp.dot(q_bd, k.T, preferred_element_type=jnp.float32) + add_mask   # (H*NQ, NK)
    s = s - jnp.max(s, axis=-1, keepdims=True)
    e = jnp.exp(s)
    p = e / jnp.sum(e, axis=-1, keepdims=True)                         # exact divide

    big = jnp.dot(p, v, preferred_element_type=jnp.float32) * head_mask     # (H*NQ, E)
    ctx = big[0:NQ]
    for h in range(1, H):                                              # (NQ, E)
        ctx = ctx + big[h * NQ:(h + 1) * NQ]

    w_o = p_ref[R_WO:R_WO + E, 0:E]
    b_o = p_ref[R_VEC + V_BO:R_VEC + V_BO + 1, 0:E]
    attn = jnp.dot(ctx, w_o, preferred_element_type=jnp.float32) + b_o      # (NQ, E)

    # --- query = norm1(query + attn_out) ------------------------------------
    g1 = p_ref[R_VEC + V_G1:R_VEC + V_G1 + 1, 0:E]
    be1 = p_ref[R_VEC + V_BE1:R_VEC + V_BE1 + 1, 0:E]
    x = x_q + attn
    mu1 = jnp.mean(x, axis=-1, keepdims=True)
    var1 = jnp.mean((x - mu1) ** 2, axis=-1, keepdims=True)
    x1 = (x - mu1) * jax.lax.rsqrt(var1 + LN_EPS) * g1 + be1

    # --- ffn(attn_out)  (module feeds attn_output to the FFN) ---------------
    w1 = p_ref[R_W1:R_W1 + E, 0:FFN]
    b1 = p_ref[R_VEC + V_B1:R_VEC + V_B1 + 1, 0:FFN]
    h1 = jnp.maximum(jnp.dot(attn, w1, preferred_element_type=jnp.float32) + b1, 0.0)
    w2 = p_ref[R_W2:R_W2 + FFN, 0:E]
    b2 = p_ref[R_VEC + V_B2:R_VEC + V_B2 + 1, 0:E]
    ffn_out = jnp.dot(h1, w2, preferred_element_type=jnp.float32) + b2       # (NQ, E)

    # --- output = norm2(norm1_out + ffn_out) --------------------------------
    g2 = p_ref[R_VEC + V_G2:R_VEC + V_G2 + 1, 0:E]
    be2 = p_ref[R_VEC + V_BE2:R_VEC + V_BE2 + 1, 0:E]
    y = x1 + ffn_out
    mu2 = jnp.mean(y, axis=-1, keepdims=True)
    var2 = jnp.mean((y - mu2) ** 2, axis=-1, keepdims=True)
    out = (y - mu2) * jax.lax.rsqrt(var2 + LN_EPS) * g2 + be2

    out_ref[...] = out.astype(out_ref.dtype)


# ---------------------------------------------------------------------------
# One-time parameter packing: fold the attention scale into Wq/bq, bake the
# masks, and place everything into a single (N_ROWS, 128) slab.
# ---------------------------------------------------------------------------
def pack_params(p):
    scale = 1.0 / math.sqrt(DH)
    P = jnp.zeros((N_ROWS, LANES), jnp.float32)

    w_qkv = jnp.concatenate([p["wq"] * scale, p["wk"], p["wv"]], axis=1)   # (E, 3E)
    P = P.at[R_WQKV:R_WQKV + E, 0:3 * E].set(w_qkv)
    P = P.at[R_WO:R_WO + E, 0:E].set(p["wo"])
    P = P.at[R_W1:R_W1 + E, 0:FFN].set(p["w1"])
    P = P.at[R_W2:R_W2 + FFN, 0:E].set(p["w2"])

    # head-selector mask: row r -> head r // NQ; lane c -> head c // DH
    r = np.arange(H * NQ)
    head_mask = (np.arange(E)[None, :] // DH == (r[:, None] // NQ)).astype(np.float32)
    P = P.at[R_HMASK:R_HMASK + H * NQ, 0:E].set(jnp.asarray(head_mask))

    # additive cross-batch mask: query i = r % NQ, key j; forbid cross-batch
    qi = r % NQ
    kj = np.arange(NK)
    add_mask = np.where((qi[:, None] // LQ) == (kj[None, :] // LK), 0.0, -1e30)
    P = P.at[R_BMASK:R_BMASK + H * NQ, 0:NK].set(jnp.asarray(add_mask.astype(np.float32)))

    b_qkv = jnp.concatenate([p["bq"] * scale, p["bk"], p["bv"]], axis=1)   # (1, 3E)
    P = P.at[R_VEC + V_BQKV, 0:3 * E].set(b_qkv[0])
    P = P.at[R_VEC + V_B1, 0:FFN].set(p["b1"][0])
    P = P.at[R_VEC + V_BO, 0:E].set(p["bo"][0])
    P = P.at[R_VEC + V_G1, 0:E].set(p["g1"][0])
    P = P.at[R_VEC + V_BE1, 0:E].set(p["be1"][0])
    P = P.at[R_VEC + V_G2, 0:E].set(p["g2"][0])
    P = P.at[R_VEC + V_BE2, 0:E].set(p["be2"][0])
    P = P.at[R_VEC + V_B2, 0:E].set(p["b2"][0])
    return P


_COST = pl.CostEstimate(flops=721_000, transcendentals=1_056, bytes_accessed=192_512)


@jax.jit
def cross_attention_layer(query, key, value, param_slab):
    """query: (B, LQ, E); key/value: (B, LK, E). Returns (B, LQ, E)."""
    out = pl.pallas_call(
        cross_attention_kernel,
        out_shape=jax.ShapeDtypeStruct((NQ, E), jnp.float32),
        cost_estimate=_COST,
    )(query.reshape(NQ, E), key.reshape(NK, E), value.reshape(NK, E), param_slab)
    return out.reshape(B, LQ, E)


# ---------------------------------------------------------------------------
# Pure-JAX reference (mirrors PyTorch forward semantics, eval-mode dropout)
# ---------------------------------------------------------------------------
def reference(query, key, value, p):
    def proj(x, w, b):
        return x @ w + b

    q = proj(query, p["wq"], p["bq"])
    k = proj(key, p["wk"], p["bk"])
    v = proj(value, p["wv"], p["bv"])

    def split(x, L):
        return x.reshape(B, L, H, DH).transpose(0, 2, 1, 3)  # (B,H,L,DH)

    qh, kh, vh = split(q, LQ), split(k, LK), split(v, LK)
    s = jnp.einsum("bhqd,bhkd->bhqk", qh, kh) / (DH ** 0.5)
    pattn = jax.nn.softmax(s, axis=-1)
    ctx = jnp.einsum("bhqk,bhkd->bhqd", pattn, vh)
    ctx = ctx.transpose(0, 2, 1, 3).reshape(B, LQ, E)
    attn_out = ctx @ p["wo"] + p["bo"]

    def ln(x, g, b):
        mu = jnp.mean(x, axis=-1, keepdims=True)
        var = jnp.mean((x - mu) ** 2, axis=-1, keepdims=True)
        return (x - mu) / jnp.sqrt(var + LN_EPS) * g + b

    x1 = ln(query + attn_out, p["g1"], p["be1"])
    ffn_out = jnp.maximum(attn_out @ p["w1"] + p["b1"], 0.0) @ p["w2"] + p["b2"]
    return ln(x1 + ffn_out, p["g2"], p["be2"])


def make_params(key):
    keys = jax.random.split(key, 12)
    s = 0.02
    return {
        "wq": s * jax.random.normal(keys[0], (E, E), jnp.float32),
        "wk": s * jax.random.normal(keys[1], (E, E), jnp.float32),
        "wv": s * jax.random.normal(keys[2], (E, E), jnp.float32),
        "bq": s * jax.random.normal(keys[3], (1, E), jnp.float32),
        "bk": s * jax.random.normal(keys[4], (1, E), jnp.float32),
        "bv": s * jax.random.normal(keys[5], (1, E), jnp.float32),
        "wo": s * jax.random.normal(keys[6], (E, E), jnp.float32),
        "bo": s * jax.random.normal(keys[7], (1, E), jnp.float32),
        "g1": jnp.ones((1, E), jnp.float32),
        "be1": jnp.zeros((1, E), jnp.float32),
        "g2": jnp.ones((1, E), jnp.float32),
        "be2": jnp.zeros((1, E), jnp.float32),
        "w1": s * jax.random.normal(keys[8], (E, FFN), jnp.float32),
        "b1": s * jax.random.normal(keys[9], (1, FFN), jnp.float32),
        "w2": s * jax.random.normal(keys[10], (FFN, E), jnp.float32),
        "b2": s * jax.random.normal(keys[11], (1, E), jnp.float32),
    }


if __name__ == "__main__":
    root = jax.random.PRNGKey(0)
    k_q, k_k, k_v, k_p = jax.random.split(root, 4)

    query = jax.random.normal(k_q, (B, LQ, E), jnp.float32)
    key_in = jax.random.normal(k_k, (B, LK, E), jnp.float32)
    value = jax.random.normal(k_v, (B, LK, E), jnp.float32)
    params = make_params(k_p)
    param_slab = pack_params(params)   # once, not per call

    out = cross_attention_layer(query, key_in, value, param_slab)
    out = jax.block_until_ready(out)

    ref = reference(query, key_in, value, params)
    assert out.shape == (B, LQ, E)
    assert jnp.allclose(out, ref, atol=1e-4, rtol=1e-4), "mismatch vs reference"

    print("KERNEL_OK")
</pallas_src>

<mosaic_0001>
module attributes {stable_mosaic.version = 11 : i64} {
  func.func @cross_attention_kernel(%arg0: memref<16x32xf32, #tpu.memory_space<vmem>>, %arg1: memref<16x32xf32, #tpu.memory_space<vmem>>, %arg2: memref<16x32xf32, #tpu.memory_space<vmem>>, %arg3: memref<360x128xf32, #tpu.memory_space<vmem>>, %arg4: memref<16x32xf32, #tpu.memory_space<vmem>>) attributes {dimension_semantics = [], scalar_prefetch = 0 : i64, scratch_operands = 0 : i64, tpu.core_type = #tpu.core_type<tc>} {
    %c0 = arith.constant 0 : index
    %c0_0 = arith.constant 0 : index
    %0 = vector.load %arg0[%c0, %c0_0] : memref<16x32xf32, #tpu.memory_space<vmem>>, vector<16x32xf32>
    %c0_1 = arith.constant 0 : index
    %c0_2 = arith.constant 0 : index
    %1 = vector.load %arg1[%c0_1, %c0_2] : memref<16x32xf32, #tpu.memory_space<vmem>>, vector<16x32xf32>
    %c0_3 = arith.constant 0 : index
    %c0_4 = arith.constant 0 : index
    %2 = vector.load %arg2[%c0_3, %c0_4] : memref<16x32xf32, #tpu.memory_space<vmem>>, vector<16x32xf32>
    %3 = tpu.concatenate %0, %1, %2 in 0 : vector<16x32xf32>, vector<16x32xf32>, vector<16x32xf32> -> vector<48x32xf32>
    %c0_5 = arith.constant 0 : index
    %c0_6 = arith.constant 0 : index
    %4 = vector.load %arg3[%c0_5, %c0_6] : memref<360x128xf32, #tpu.memory_space<vmem>>, vector<32x96xf32>
    %c352 = arith.constant 352 : index
    %c0_7 = arith.constant 0 : index
    %5 = vector.load %arg3[%c352, %c0_7] : memref<360x128xf32, #tpu.memory_space<vmem>>, vector<1x96xf32>
    %cst = arith.constant dense<0.000000e+00> : vector<48x96xf32>
    %6 = tpu.matmul %3, %4, %cst {dimension_numbers = #tpu.dot_dimension_numbers<[1], [0], [0], [1], [0, 0, 1, 1], [], []>} : vector<48x32xf32>, vector<32x96xf32>, vector<48x96xf32> -> vector<48x96xf32>
    %7 = vector.broadcast %5 : vector<1x96xf32> to vector<48x96xf32>
    %8 = arith.addf %6, %7 : vector<48x96xf32>
    %9 = vector.extract_strided_slice %8 {offsets = [0, 0], sizes = [16, 32], strides = [1, 1]} : vector<48x96xf32> to vector<16x32xf32>
    %10 = vector.extract_strided_slice %8 {offsets = [16, 32], sizes = [16, 32], strides = [1, 1]} : vector<48x96xf32> to vector<16x32xf32>
    %11 = vector.extract_strided_slice %8 {offsets = [32, 64], sizes = [16, 32], strides = [1, 1]} : vector<48x96xf32> to vector<16x32xf32>
    %c224 = arith.constant 224 : index
    %c0_8 = arith.constant 0 : index
    %12 = vector.load %arg3[%c224, %c0_8] : memref<360x128xf32, #tpu.memory_space<vmem>>, vector<64x32xf32>
    %c288 = arith.constant 288 : index
    %c0_9 = arith.constant 0 : index
    %13 = vector.load %arg3[%c288, %c0_9] : memref<360x128xf32, #tpu.memory_space<vmem>>, vector<64x16xf32>
    %14 = tpu.concatenate %9, %9, %9, %9 in 0 : vector<16x32xf32>, vector<16x32xf32>, vector<16x32xf32>, vector<16x32xf32> -> vector<64x32xf32>
    %15 = arith.mulf %14, %12 : vector<64x32xf32>
    %16 = tpu.transpose %10, [1, 0] : vector<16x32xf32> -> vector<32x16xf32>
    %cst_10 = arith.constant dense<0.000000e+00> : vector<64x16xf32>
    %17 = tpu.matmul %15, %16, %cst_10 {dimension_numbers = #tpu.dot_dimension_numbers<[1], [0], [0], [1], [0, 0, 1, 1], [], []>} : vector<64x32xf32>, vector<32x16xf32>, vector<64x16xf32> -> vector<64x16xf32>
    %18 = arith.addf %17, %13 : vector<64x16xf32>
    %cst_11 = arith.constant dense<0xFF800000> : vector<64xf32>
    %19 = vector.multi_reduction <maximumf>, %18, %cst_11 [1] : vector<64x16xf32> to vector<64xf32>
    %20 = vector.shape_cast %19 : vector<64xf32> to vector<64x1xf32>
    %21 = vector.broadcast %20 : vector<64x1xf32> to vector<64x16xf32>
    %22 = arith.subf %18, %21 : vector<64x16xf32>
    %23 = math.exp %22 : vector<64x16xf32>
    %cst_12 = arith.constant dense<0.000000e+00> : vector<64xf32>
    %24 = vector.multi_reduction <add>, %23, %cst_12 [1] : vector<64x16xf32> to vector<64xf32>
    %25 = vector.shape_cast %24 : vector<64xf32> to vector<64x1xf32>
    %26 = vector.broadcast %25 : vector<64x1xf32> to vector<64x16xf32>
    %27 = arith.divf %23, %26 : vector<64x16xf32>
    %cst_13 = arith.constant dense<0.000000e+00> : vector<64x32xf32>
    %28 = tpu.matmul %27, %11, %cst_13 {dimension_numbers = #tpu.dot_dimension_numbers<[1], [0], [0], [1], [0, 0, 1, 1], [], []>} : vector<64x16xf32>, vector<16x32xf32>, vector<64x32xf32> -> vector<64x32xf32>
    %29 = arith.mulf %28, %12 : vector<64x32xf32>
    %30 = vector.extract_strided_slice %29 {offsets = [0, 0], sizes = [16, 32], strides = [1, 1]} : vector<64x32xf32> to vector<16x32xf32>
    %31 = vector.extract_strided_slice %29 {offsets = [16, 0], sizes = [16, 32], strides = [1, 1]} : vector<64x32xf32> to vector<16x32xf32>
    %32 = arith.addf %30, %31 : vector<16x32xf32>
    %33 = vector.extract_strided_slice %29 {offsets = [32, 0], sizes = [16, 32], strides = [1, 1]} : vector<64x32xf32> to vector<16x32xf32>
    %34 = arith.addf %32, %33 : vector<16x32xf32>
    %35 = vector.extract_strided_slice %29 {offsets = [48, 0], sizes = [16, 32], strides = [1, 1]} : vector<64x32xf32> to vector<16x32xf32>
    %36 = arith.addf %34, %35 : vector<16x32xf32>
    %c32 = arith.constant 32 : index
    %c0_14 = arith.constant 0 : index
    %37 = vector.load %arg3[%c32, %c0_14] : memref<360x128xf32, #tpu.memory_space<vmem>>, vector<32x32xf32>
    %c354 = arith.constant 354 : index
    %c0_15 = arith.constant 0 : index
    %38 = vector.load %arg3[%c354, %c0_15] : memref<360x128xf32, #tpu.memory_space<vmem>>, vector<1x32xf32>
    %cst_16 = arith.constant dense<0.000000e+00> : vector<16x32xf32>
    %39 = tpu.matmul %36, %37, %cst_16 {dimension_numbers = #tpu.dot_dimension_numbers<[1], [0], [0], [1], [0, 0, 1, 1], [], []>} : vector<16x32xf32>, vector<32x32xf32>, vector<16x32xf32> -> vector<16x32xf32>
    %40 = vector.broadcast %38 : vector<1x32xf32> to vector<16x32xf32>
    %41 = arith.addf %39, %40 : vector<16x32xf32>
    %c355 = arith.constant 355 : index
    %c0_17 = arith.constant 0 : index
    %42 = vector.load %arg3[%c355, %c0_17] : memref<360x128xf32, #tpu.memory_space<vmem>>, vector<1x32xf32>
    %c356 = arith.constant 356 : index
    %c0_18 = arith.constant 0 : index
    %43 = vector.load %arg3[%c356, %c0_18] : memref<360x128xf32, #tpu.memory_space<vmem>>, vector<1x32xf32>
    %44 = arith.addf %0, %41 : vector<16x32xf32>
    %cst_19 = arith.constant dense<0.000000e+00> : vector<16xf32>
    %45 = vector.multi_reduction <add>, %44, %cst_19 [1] : vector<16x32xf32> to vector<16xf32>
    %46 = vector.shape_cast %45 : vector<16xf32> to vector<16x1xf32>
    %cst_20 = arith.constant 3.200000e+01 : f32
    %47 = vector.broadcast %cst_20 : f32 to vector<16x1xf32>
    %48 = arith.divf %46, %47 : vector<16x1xf32>
    %49 = vector.broadcast %48 : vector<16x1xf32> to vector<16x32xf32>
    %50 = arith.subf %44, %49 : vector<16x32xf32>
    %51 = arith.mulf %50, %50 : vector<16x32xf32>
    %cst_21 = arith.constant dense<0.000000e+00> : vector<16xf32>
    %52 = vector.multi_reduction <add>, %51, %cst_21 [1] : vector<16x32xf32> to vector<16xf32>
    %53 = vector.shape_cast %52 : vector<16xf32> to vector<16x1xf32>
    %cst_22 = arith.constant 3.200000e+01 : f32
    %54 = vector.broadcast %cst_22 : f32 to vector<16x1xf32>
    %55 = arith.divf %53, %54 : vector<16x1xf32>
    %56 = vector.broadcast %48 : vector<16x1xf32> to vector<16x32xf32>
    %57 = arith.subf %44, %56 : vector<16x32xf32>
    %cst_23 = arith.constant 9.99999974E-6 : f32
    %58 = vector.broadcast %cst_23 : f32 to vector<16x1xf32>
    %59 = arith.addf %55, %58 : vector<16x1xf32>
    %60 = math.rsqrt %59 : vector<16x1xf32>
    %61 = vector.broadcast %60 : vector<16x1xf32> to vector<16x32xf32>
    %62 = arith.mulf %57, %61 : vector<16x32xf32>
    %63 = vector.broadcast %42 : vector<1x32xf32> to vector<16x32xf32>
    %64 = arith.mulf %62, %63 : vector<16x32xf32>
    %65 = vector.broadcast %43 : vector<1x32xf32> to vector<16x32xf32>
    %66 = arith.addf %64, %65 : vector<16x32xf32>
    %c64 = arith.constant 64 : index
    %c0_24 = arith.constant 0 : index
    %67 = vector.load %arg3[%c64, %c0_24] : memref<360x128xf32, #tpu.memory_space<vmem>>, vector<32x128xf32>
    %c353 = arith.constant 353 : index
    %c0_25 = arith.constant 0 : index
    %68 = vector.load %arg3[%c353, %c0_25] : memref<360x128xf32, #tpu.memory_space<vmem>>, vector<1x128xf32>
    %cst_26 = arith.constant dense<0.000000e+00> : vector<16x128xf32>
    %69 = tpu.matmul %41, %67, %cst_26 {dimension_numbers = #tpu.dot_dimension_numbers<[1], [0], [0], [1], [0, 0, 1, 1], [], []>} : vector<16x32xf32>, vector<32x128xf32>, vector<16x128xf32> -> vector<16x128xf32>
    %70 = vector.broadcast %68 : vector<1x128xf32> to vector<16x128xf32>
    %71 = arith.addf %69, %70 : vector<16x128xf32>
    %cst_27 = arith.constant 0.000000e+00 : f32
    %72 = vector.broadcast %cst_27 : f32 to vector<16x128xf32>
    %73 = arith.maximumf %71, %72 : vector<16x128xf32>
    %c96 = arith.constant 96 : index
    %c0_28 = arith.constant 0 : index
    %74 = vector.load %arg3[%c96, %c0_28] : memref<360x128xf32, #tpu.memory_space<vmem>>, vector<128x32xf32>
    %c359 = arith.constant 359 : index
    %c0_29 = arith.constant 0 : index
    %75 = vector.load %arg3[%c359, %c0_29] : memref<360x128xf32, #tpu.memory_space<vmem>>, vector<1x32xf32>
    %cst_30 = arith.constant dense<0.000000e+00> : vector<16x32xf32>
    %76 = tpu.matmul %73, %74, %cst_30 {dimension_numbers = #tpu.dot_dimension_numbers<[1], [0], [0], [1], [0, 0, 1, 1], [], []>} : vector<16x128xf32>, vector<128x32xf32>, vector<16x32xf32> -> vector<16x32xf32>
    %77 = vector.broadcast %75 : vector<1x32xf32> to vector<16x32xf32>
    %78 = arith.addf %76, %77 : vector<16x32xf32>
    %c357 = arith.constant 357 : index
    %c0_31 = arith.constant 0 : index
    %79 = vector.load %arg3[%c357, %c0_31] : memref<360x128xf32, #tpu.memory_space<vmem>>, vector<1x32xf32>
    %c358 = arith.constant 358 : index
    %c0_32 = arith.constant 0 : index
    %80 = vector.load %arg3[%c358, %c0_32] : memref<360x128xf32, #tpu.memory_space<vmem>>, vector<1x32xf32>
    %81 = arith.addf %66, %78 : vector<16x32xf32>
    %cst_33 = arith.constant dense<0.000000e+00> : vector<16xf32>
    %82 = vector.multi_reduction <add>, %81, %cst_33 [1] : vector<16x32xf32> to vector<16xf32>
    %83 = vector.shape_cast %82 : vector<16xf32> to vector<16x1xf32>
    %cst_34 = arith.constant 3.200000e+01 : f32
    %84 = vector.broadcast %cst_34 : f32 to vector<16x1xf32>
    %85 = arith.divf %83, %84 : vector<16x1xf32>
    %86 = vector.broadcast %85 : vector<16x1xf32> to vector<16x32xf32>
    %87 = arith.subf %81, %86 : vector<16x32xf32>
    %88 = arith.mulf %87, %87 : vector<16x32xf32>
    %cst_35 = arith.constant dense<0.000000e+00> : vector<16xf32>
    %89 = vector.multi_reduction <add>, %88, %cst_35 [1] : vector<16x32xf32> to vector<16xf32>
    %90 = vector.shape_cast %89 : vector<16xf32> to vector<16x1xf32>
    %cst_36 = arith.constant 3.200000e+01 : f32
    %91 = vector.broadcast %cst_36 : f32 to vector<16x1xf32>
    %92 = arith.divf %90, %91 : vector<16x1xf32>
    %93 = vector.broadcast %85 : vector<16x1xf32> to vector<16x32xf32>
    %94 = arith.subf %81, %93 : vector<16x32xf32>
    %cst_37 = arith.constant 9.99999974E-6 : f32
    %95 = vector.broadcast %cst_37 : f32 to vector<16x1xf32>
    %96 = arith.addf %92, %95 : vector<16x1xf32>
    %97 = math.rsqrt %96 : vector<16x1xf32>
    %98 = vector.broadcast %97 : vector<16x1xf32> to vector<16x32xf32>
    %99 = arith.mulf %94, %98 : vector<16x32xf32>
    %100 = vector.broadcast %79 : vector<1x32xf32> to vector<16x32xf32>
    %101 = arith.mulf %99, %100 : vector<16x32xf32>
    %102 = vector.broadcast %80 : vector<1x32xf32> to vector<16x32xf32>
    %103 = arith.addf %101, %102 : vector<16x32xf32>
    %c0_38 = arith.constant 0 : index
    %c0_39 = arith.constant 0 : index
    %104 = vector.load %arg4[%c0_38, %c0_39] : memref<16x32xf32, #tpu.memory_space<vmem>>, vector<16x32xf32>
    tpu.vector_store %arg4[%c0_38, %c0_39], %103 {strides = array<i32>} : memref<16x32xf32, #tpu.memory_space<vmem>>, vector<16x32xf32>,
    return
  }
}

</mosaic_0001>

<bundles_post_ra>
// kernel: cross_attention_layer.1
= control target key start
LH: loop header
LB: loop body
LE: loop exit
PB: predicated region body
PF: predicated region fallthrough
CT: control target
= control target key end

     0   :  { %9 = vsyncpa [#allocation3], 0  ;;  %s1603_s0 = inlined_call_operand.hbm [shape: f32[16,32], index: 0, kind: input, shape index: {}]   ;;  %s1604_s1 = inlined_call_operand.hbm [shape: f32[16,32], index: 1, kind: input, shape index: {}]   ;;  %s1605_s2 = inlined_call_operand.vmem [shape: f32[16,32], index: 2, kind: input, shape index: {}]   ;;  %s1606_s3 = inlined_call_operand.hbm [shape: f32[360,128], index: 3, kind: input, shape index: {}]   ;;  %s1607_s4 = inlined_call_operand.hbm [shape: f32[16,32], index: 4, kind: output, shape index: {}]  }
   0x1   :  { %10 = vsyncpa [#allocation6], 0 }
   0x2   :  { %11 = vsyncpa [#allocation4], 0  ;;  %s1394_s15 = smov [#allocation5]   ;;  %s1395_s17 = smov [#allocation2]  }
   0x3   :  { %s29_s16 = sshll.u32 %s1394_s15, 4  ;;  %s17_s18 = sshll.u32 %s1395_s17, 4  ;;  %s30_s16 = int_to_ptr.vmem [resolvable:$true] %s29_s16  ;;  %s1427_s18 = int_to_ptr.vmem [resolvable:$true] %s17_s18 }
   0x4   :  { %s1300_s21 = scalar_lea.hbm %s1604_s1, 256 }
   0x5   :  { %p1301_p0 = scmp.ne.s32.totalorder %s1604_s1, %s1300_s21  ;;  %p1304_p1 = scmp.lt.u32.totalorder %s1300_s21, %s1604_s1 }
   0x7   :  { %p1306_p2 = pnand %p1304_p1, %p1301_p0 }
   0x9   :  { %1309 = shalt.err (!%p1306_p2)
}
   0xa   :  { %s1310_s26 = scalar_lea.vmem %s30_s16, 256  ;;  %p1315_p4 = scmp.lt.s32.totalorder %s30_s16, %s30_s16 }
   0xb   :  { %p1311_p3 = scmp.ne.s32.totalorder %s30_s16, %s1310_s26  ;;  %p1316_p5 = scmp.lt.s32.totalorder %s1310_s26, %s1310_s26 }
   0xd   :  { %p1317_p6 = por %p1316_p5, %p1315_p4 }
   0xf   :  { %p1318_p7 = pnand %p1317_p6, %p1311_p3 }
  0x11   :  { %1321 = shalt.err (!%p1318_p7)
}
  0x12   :  { %s1396_s27 = smov 128   ;;  %s1397_s28 = smov 8  }
  0x13   :  { %35 = dma.hbm_to_vmem [thread:$0]  %s1604_s1, 256, %s30_s16, [#allocation6], %s1396_s27, %s1396_s27, %s1397_s28  }
  0x14   :  { %s1322_s7 = scalar_lea.hbm %s1603_s0, 256 }
  0x15   :  { %p1323_p8 = scmp.ne.s32.totalorder %s1603_s0, %s1322_s7  ;;  %p1326_p9 = scmp.lt.u32.totalorder %s1322_s7, %s1603_s0 }
  0x17   :  { %p1328_p10 = pnand %p1326_p9, %p1323_p8 }
  0x19   :  { %1331 = shalt.err (!%p1328_p10)
}
  0x1a   :  { %s1332_s12 = scalar_lea.vmem %s1427_s18, 256  ;;  %p1337_p12 = scmp.lt.s32.totalorder %s1427_s18, %s1427_s18 }
  0x1b   :  { %p1333_p11 = scmp.ne.s32.totalorder %s1427_s18, %s1332_s12  ;;  %p1338_p13 = scmp.lt.s32.totalorder %s1332_s12, %s1332_s12 }
  0x1d   :  { %p1339_p0 = por %p1338_p13, %p1337_p12 }
  0x1f   :  { %p1340_p1 = pnand %p1339_p0, %p1333_p11 }
  0x21   :  { %1343 = shalt.err (!%p1340_p1)
}
  0x22   :  { %23 = dma.hbm_to_vmem [thread:$0]  %s1603_s0, 256, %s1427_s18, [#allocation3], %s1396_s27, %s1396_s27, %s1397_s28  }
  0x23   :  { %s1398_s14 = smov [#allocation7]   ;;  %s1344_s19 = scalar_lea.hbm %s1606_s3, 5760 }
  0x24   :  { %s43_s15 = sshll.u32 %s1398_s14, 4  ;;  %p1345_p2 = scmp.ne.s32.totalorder %s1606_s3, %s1344_s19  ;;  %s44_s15 = int_to_ptr.vmem [resolvable:$true] %s43_s15 }
  0x25   :  { %p1348_p3 = scmp.lt.u32.totalorder %s1344_s19, %s1606_s3 }
  0x27   :  { %p1350_p4 = pnand %p1348_p3, %p1345_p2 }
  0x29   :  { %1353 = shalt.err (!%p1350_p4)
}
  0x2a   :  { %s1354_s24 = scalar_lea.vmem %s44_s15, 5760  ;;  %p1359_p6 = scmp.lt.s32.totalorder %s44_s15, %s44_s15 }
  0x2b   :  { %p1355_p5 = scmp.ne.s32.totalorder %s44_s15, %s1354_s24  ;;  %p1360_p7 = scmp.lt.s32.totalorder %s1354_s24, %s1354_s24 }
  0x2d   :  { %p1361_p8 = por %p1360_p7, %p1359_p6 }
  0x2f   :  { %p1362_p9 = pnand %p1361_p8, %p1355_p5 }
  0x31   :  { %1365 = shalt.err (!%p1362_p9)
}
  0x32   :  { %49 = dma.hbm_to_vmem [thread:$0]  %s1606_s3, 5760, %s44_s15, [#allocation6], %s1396_s27, %s1396_s27, %s1397_s28  }
  0x33   :  { %1388 = dma.done.wait [#allocation3], 256  }
  0x34   :  { %1389 = vsyncadd [#allocation3], 4294967040 }
  0x35   :  { %1390 = dma.done.wait [#allocation6], 6016  }
  0x36   :  { %1391 = vsyncadd [#allocation6], 4294961280  ;;  %vm74_vm0 = vcmask 261120   ;;  %v65_v0 = vld [vmem:[#allocation7] sm:$0xff]  ;;  %v66_v1 = vld [vmem:[#allocation7 + $0x8] sm:$0xff]  ;;  %s1399_s30 = smov 96  }
  0x37   :  { %v67_v2 = vld [vmem:[#allocation7 + $0x10] sm:$0xff]  ;;  %v1176_v3 = vpack.c.bf16 %v66_v1, %v65_v0  ;;  %v68_v4 = vld [vmem:[#allocation7 + $0x18] sm:$0xff]  ;;  %v1479_v5 = vld [vmem:[#allocation2] sm:$0xff]  ;;  %vm351_vm2 = vcmask 130048   ;;  %s1401_s5 = smov [#allocation8]  }
  0x38   :  { %v1180_v6 = vpack.c.bf16 %v68_v4, %v67_v2  ;;  %1078 = vmatprep.mubr.msk.f32.mxu1 %vm74_vm0, %v1479_v5  ;;  %v1483_v7 = vld [vmem:[#allocation2 + $0x8] sm:$0xff]  ;;  %v61_v8 = vld [vmem:[#allocation5] sm:$0xff]  ;;  %v62_v9 = vld [vmem:[#allocation5 + $0x8] sm:$0xff]  ;;  %s961_s6 = sshll.u32 %s1401_s5, 4  ;;  %s962_s6 = int_to_ptr.vmem [resolvable:$true] %s961_s6 }
  0x39   :  { %1177 = vmatprep.subr.bf16.mxu1 %v1176_v3  ;;  %v63_v10 = vld [vmem:[%s1605_s2] sm:$0xff]  ;;  %v64_v11 = vld [vmem:[%s1605_s2 + $0x8] sm:$0xff]  ;;  %vm1185_vm1 = vmpackc.low %vm74_vm0, %vm74_vm0  ;;  %s1400_s2 = smov 64   ;;  %s1366_s7 = scalar_lea.vmem %s962_s6, 256 }
  0x3a   :  { %1179 = vmatpush3.bf16.msra.mxu1 %v1176_v3  ;;  %v974_v12 = vld [vmem:[#allocation7 + $0x160] ss:$0 sm:$0xff]  ;;  %v1509_v33 = vld [vmem:[#allocation7 + $0xe8] sm:$0xff]  ;;  %v1511_v34 = vld [vmem:[#allocation7 + $0xf0] sm:$0xff]  ;;  %p1367_p10 = scmp.ne.s32.totalorder %s962_s6, %s1366_s7  ;;  %p1371_p11 = scmp.lt.s32.totalorder %s962_s6, %s962_s6 }
  0x3b   :  { %1181 = vmatprep.subr.bf16.mxu1 %v1180_v6  ;;  %v1497_v15 = vld [vmem:[#allocation7 + $0xe0] sm:$0xff]  ;;  %v1515_v37 = vld [vmem:[#allocation7 + $0xf8] sm:$0xff]  ;;  %v1523_v41 = vld [vmem:[#allocation7 + $0x108] sm:$0xff]  ;;  %p1372_p12 = scmp.lt.s32.totalorder %s1366_s7, %s1366_s7 }
  0x3c   :  { %v1518_v38 = vld [vmem:[#allocation7 + $0x100] sm:$0xff]  ;;  %v1526_v42 = vld [vmem:[#allocation7 + $0x110] sm:$0xff]  ;;  %v1531_v45 = vld [vmem:[#allocation7 + $0x118] sm:$0xff] }
  0x3d   :  { %v197_v47 = vld [vmem:[#allocation7 + $0x128] sm:$0xff]  ;;  %v196_v48 = vld [vmem:[#allocation7 + $0x120] sm:$0xff]  ;;  %v199_v53 = vld [vmem:[#allocation7 + $0x138] sm:$0xff]  ;;  %p1373_p13 = por %p1372_p12, %p1371_p11 }
  0x3e   :  { %1183 = vmatpush3.bf16.msra.mxu1 %v1180_v6  ;;  %v198_v56 = vld [vmem:[#allocation7 + $0x130] sm:$0xff]  ;;  %v201_v62 = vld [vmem:[#allocation7 + $0x148] sm:$0xff]  ;;  %v200_v3 = vld [vmem:[#allocation7 + $0x140] sm:$0xff] }
  0x3f   :  { %p1374_p0 = pnand %p1373_p13, %p1367_p10 }
  0x41   :  { %1079 = vmatmul.mubr.msk.f32.vlgmr.msra.gmra.mrb[0].mxu1 %vm74_vm0, %v1483_v7 }
  0x42   :  { %1081 = vmatprep.mubr.msk.f32.mxu1 %vm74_vm0, %v61_v8 }
  0x45   :  { %1082 = vmatmul.mubr.msk.f32.gmra.mrb[2].mxu1 %vm74_vm0, %v62_v9 }
  0x46   :  { %1084 = vmatprep.mubr.msk.f32.mxu1 %vm74_vm0, %v63_v10  ;;  %v202_v10 = vld [vmem:[#allocation7 + $0x150] sm:$0xff] }
  0x49   :  { %1085 = vmatmul.mubr.msk.f32.gmra.mrb[4].mxu1 %vm74_vm0, %v64_v11 }
 0x114   :  { %v1080_v13 = vpop.f32.mrb[0].mxu1 }
 0x115   :  { %v159_v14 = vpop.f32.mrb[1].mxu1  ;;  %v165_v32 = vadd.f32 %v1080_v13, %v974_v12  ;;  %v203_v13 = vld [vmem:[#allocation7 + $0x158] sm:$0xff] }
 0x116   :  { %v160_v16 = vadd.f32 %v974_v12, %v159_v14 }
 0x117   :  { %v205_v35 = vmul.f32 %v1509_v33, %v165_v32  ;;  %v207_v39 = vmul.f32 %v1515_v37, %v165_v32  ;;  %v209_v43 = vmul.f32 %v1523_v41, %v165_v32  ;;  %v211_v46 = vmul.f32 %v1531_v45, %v165_v32 }
 0x118   :  { %v1083_v17 = vpop.f32.mrb[2].mxu1  ;;  %v204_v18 = vmul.f32 %v1497_v15, %v160_v16  ;;  %v206_v36 = vmul.f32 %v1511_v34, %v160_v16  ;;  %v208_v40 = vmul.f32 %v1518_v38, %v160_v16  ;;  %v210_v44 = vmul.f32 %v1526_v42, %v160_v16 }
 0x119   :  { %v175_v19 = vadd.f32 %v1083_v17, %v974_v12  ;;  %v169_v20 = vpop.f32.mrb[3].mxu1 }
 0x11a   :  { %v170_v21 = vadd.f32 %v974_v12, %v169_v20  ;;  %1091 = vmatprep.mubr.msk.f32.mxu1 %vm74_vm0, %v204_v18 }
 0x11c   :  { %v1250_v22 = vpack.i.bf16 %v175_v19, %v170_v21  ;;  %v1086_v23 = vpop.f32.mrb[4].mxu1 }
 0x11d   :  { %v1501_v24 = vadd.f32 %v1086_v23, %v974_v12  ;;  %v179_v25 = vpop.f32.mrb[5].mxu1 }
 0x11e   :  { %1251 = vrot.lane.b32.xlu0 %v1250_v22, %s1399_s30  ;;  %v1503_v26 = vadd.f32 %v974_v12, %v179_v25 }
 0x120   :  { %v1255_v27 = vpack.i.bf16 %v1501_v24, %v1503_v26 }
 0x190   :  { %v1252_v28 = vpop.permute.xlu0 %1251 }
 0x191   :  { %v1254_v29 = vunpack.i.h.bf16 %v1252_v28  ;;  %v1253_v30 = vunpack.i.l.bf16 %v1252_v28 }
 0x193   :  { %v1184_v31 = vpack.c.bf16 %v1254_v29, %v1253_v30 }
 0x195   :  { %1186 = vmatprep.subr.msk.bf16.mxu1 %vm1185_vm1, %v1184_v31 }
 0x196   :  { %1189 = vmatpush3.bf16.xpose.msk.msra.mxu1 %vm1185_vm1, %v1184_v31 }
 0x19d   :  { %1092 = vmatmul.mubr.msk.f32.vlgmr.msra.gmra.mrb[6].mxu1 %vm74_vm0, %v205_v35 }
 0x19e   :  { %1094 = vmatprep.mubr.msk.f32.mxu1 %vm74_vm0, %v206_v36 }
 0x1a1   :  { %1095 = vmatmul.mubr.msk.f32.gmra.mrb[8].mxu1 %vm74_vm0, %v207_v39 }
 0x1a2   :  { %1097 = vmatprep.mubr.msk.f32.mxu1 %vm74_vm0, %v208_v40 }
 0x1a5   :  { %1098 = vmatmul.mubr.msk.f32.gmra.mrb[10].mxu1 %vm74_vm0, %v209_v43 }
 0x1a6   :  { %1100 = vmatprep.mubr.msk.f32.mxu1 %vm74_vm0, %v210_v44 }
 0x1a9   :  { %1101 = vmatmul.mubr.msk.f32.gmra.mrb[12].mxu1 %vm74_vm0, %v211_v46 }
 0x270   :  { %v1093_v49 = vpop.f32.mrb[6].mxu1 }
 0x271   :  { %v318_v50 = vadd.f32 %v1093_v49, %v197_v47  ;;  %v312_v51 = vpop.f32.mrb[7].mxu1 }
 0x272   :  { %v313_v52 = vadd.f32 %v312_v51, %v196_v48 }
 0x273   :  { %v355_v54 = vsel %vm351_vm2, %v318_v50, -inf }
 0x274   :  { %356 = vmax.xlane.f32.xlu1 %v355_v54  ;;  %v1096_v55 = vpop.f32.mrb[8].mxu1  ;;  %v352_v57 = vsel %vm351_vm2, %v313_v52, -inf }
 0x275   :  { %v328_v58 = vadd.f32 %v1096_v55, %v199_v53  ;;  %v322_v59 = vpop.f32.mrb[9].mxu1  ;;  %353 = vmax.xlane.f32.xlu0 %v352_v57 }
 0x276   :  { %v323_v60 = vadd.f32 %v322_v59, %v198_v56 }
 0x277   :  { %v361_v61 = vsel %vm351_vm2, %v328_v58, -inf }
 0x278   :  { %362 = vmax.xlane.f32.xlu1 %v361_v61  ;;  %v1099_v63 = vpop.f32.mrb[10].mxu1  ;;  %v358_v2 = vsel %vm351_vm2, %v323_v60, -inf }
 0x279   :  { %v332_v0 = vpop.f32.mrb[11].mxu1  ;;  %v338_v1 = vadd.f32 %v1099_v63, %v201_v62 }
 0x27a   :  { %v333_v8 = vadd.f32 %v332_v0, %v200_v3 }
 0x27b   :  { %v367_v9 = vsel %vm351_vm2, %v338_v1, -inf }
 0x27c   :  { %v1102_v4 = vpop.f32.mrb[12].mxu1  ;;  %359 = vmax.xlane.f32.xlu1 %v358_v2  ;;  %v364_v12 = vsel %vm351_vm2, %v333_v8, -inf }
 0x27d   :  { %v342_v6 = vpop.f32.mrb[13].mxu1  ;;  %v348_v14 = vadd.f32 %v1102_v4, %v203_v13 }
 0x27e   :  { %v343_v11 = vadd.f32 %v342_v6, %v202_v10 }
 0x27f   :  { %v373_v17 = vsel %vm351_vm2, %v348_v14, -inf }
 0x280   :  { %368 = vmax.xlane.f32.xlu1 %v367_v9  ;;  %v370_v16 = vsel %vm351_vm2, %v343_v11, -inf }
 0x284   :  { %365 = vmax.xlane.f32.xlu1 %v364_v12 }
 0x288   :  { %371 = vmax.xlane.f32.xlu1 %v370_v16 }
 0x28c   :  { %374 = vmax.xlane.f32.xlu1 %v373_v17 }
 0x301   :  { %v357_v18 = vpop.xlane.xlu1 %356 }
 0x302   :  { %v377_v19 = vsub.f32 %v318_v50, %v357_v18  ;;  %v354_v20 = vpop.xlane.xlu0 %353 }
 0x303   :  { %v376_v21 = vsub.f32 %v313_v52, %v354_v20 }
 0x304   :  { %v386_v22 = vmul.f32 1.442695, %v377_v19 }
 0x305   :  { %v384_v23 = vmul.f32 1.442695, %v376_v21  ;;  %v363_v25 = vpop.xlane.xlu1 %362 }
 0x306   :  { %v379_v28 = vsub.f32 %v328_v58, %v363_v25 }
 0x307   :  { %1260 = vpow2.f32 %v384_v23 }
 0x308   :  { %1262 = vpow2.f32 %v386_v22  ;;  %v390_v29 = vmul.f32 1.442695, %v379_v28 }
 0x309   :  { %v360_v30 = vpop.xlane.xlu1 %359 }
 0x30a   :  { %v378_v31 = vsub.f32 %v323_v60, %v360_v30  ;;  %1264 = vpow2.f32 %v390_v29 }
 0x30c   :  { %v388_v32 = vmul.f32 1.442695, %v378_v31 }
 0x30d   :  { %v369_v35 = vpop.xlane.xlu1 %368 }
 0x30e   :  { %1266 = vpow2.f32 %v388_v32  ;;  %v381_v36 = vsub.f32 %v338_v1, %v369_v35 }
 0x310   :  { %v394_v39 = vmul.f32 1.442695, %v381_v36 }
 0x311   :  { %v1261_v40 = vpop.eup %1260  ;;  %v366_v43 = vpop.xlane.xlu1 %365 }
 0x312   :  { %1268 = vpow2.f32 %v394_v39  ;;  %v380_v44 = vsub.f32 %v333_v8, %v366_v43  ;;  %v400_v46 = vsel %vm351_vm2, %v1261_v40, 0.0  ;;  %v1263_v47 = vpop.eup %1262  ;;  %v591_v39 = vld [vmem:[#allocation7 + $0x20] sm:$0xff] }
 0x313   :  { %401 = vadd.xlane.f32.xlu1 %v400_v46  ;;  %v403_v51 = vsel %vm351_vm2, %v1263_v47, 0.0  ;;  %v594_v46 = vld [vmem:[#allocation7 + $0x38] sm:$0xff] }
 0x314   :  { %v392_v48 = vmul.f32 1.442695, %v380_v44  ;;  %v1265_v52 = vpop.eup %1264  ;;  %v593_v44 = vld [vmem:[#allocation7 + $0x30] sm:$0xff] }
 0x315   :  { %v372_v49 = vpop.xlane.xlu1 %371  ;;  %v409_v58 = vsel %vm351_vm2, %v1265_v52, 0.0 }
 0x316   :  { %1270 = vpow2.f32 %v392_v48  ;;  %v382_v50 = vsub.f32 %v343_v11, %v372_v49  ;;  %v724_v48 = vld [vmem:[#allocation7 + $0x40] sm:$0xff]  ;;  %v725_v49 = vld [vmem:[#allocation7 + $0x48] sm:$0xff] }
 0x317   :  { %404 = vadd.xlane.f32.xlu1 %v403_v51 }
 0x318   :  { %v1267_v53 = vpop.eup %1266  ;;  %v396_v54 = vmul.f32 1.442695, %v382_v50  ;;  %v1202_v50 = vpack.c.bf16 %v725_v49, %v724_v48 }
 0x319   :  { %v375_v55 = vpop.xlane.xlu1 %374  ;;  %v406_v56 = vsel %vm351_vm2, %v1267_v53, 0.0 }
 0x31a   :  { %1272 = vpow2.f32 %v396_v54  ;;  %v383_v57 = vsub.f32 %v348_v14, %v375_v55  ;;  %407 = vadd.xlane.f32.xlu0 %v406_v56 }
 0x31b   :  { %410 = vadd.xlane.f32.xlu1 %v409_v58 }
 0x31c   :  { %v1269_v59 = vpop.eup %1268  ;;  %v398_v60 = vmul.f32 1.442695, %v383_v57 }
 0x31d   :  { %v415_v61 = vsel %vm351_vm2, %v1269_v59, 0.0 }
 0x31e   :  { %1274 = vpow2.f32 %v398_v60 }
 0x31f   :  { %416 = vadd.xlane.f32.xlu1 %v415_v61 }
 0x320   :  { %v1271_v62 = vpop.eup %1270 }
 0x321   :  { %v412_v63 = vsel %vm351_vm2, %v1271_v62, 0.0 }
 0x322   :  { %413 = vadd.xlane.f32.xlu0 %v412_v63 }
 0x324   :  { %v1273_v0 = vpop.eup %1272 }
 0x325   :  { %v418_v1 = vsel %vm351_vm2, %v1273_v0, 0.0 }
 0x326   :  { %419 = vadd.xlane.f32.xlu0 %v418_v1 }
 0x328   :  { %v1275_v2 = vpop.eup %1274 }
 0x329   :  { %v421_v3 = vsel %vm351_vm2, %v1275_v2, 0.0 }
 0x32a   :  { %422 = vadd.xlane.f32.xlu1 %v421_v3 }
 0x33c   :  { %1256 = vrot.lane.b32.xlu0 %v1255_v27, %s1400_s2 }
 0x3a0   :  { %v402_v4 = vpop.xlane.xlu1 %401 }
 0x3a1   :  { %1276 = vrcp.f32 %v402_v4 }
 0x3a4   :  { %v405_v6 = vpop.xlane.xlu1 %404 }
 0x3a5   :  { %1278 = vrcp.f32 %v405_v6 }
 0x3a7   :  { %v408_v9 = vpop.xlane.xlu0 %407 }
 0x3a8   :  { %v411_v12 = vpop.xlane.xlu1 %410  ;;  %1280 = vrcp.f32 %v408_v9 }
 0x3a9   :  { %1282 = vrcp.f32 %v411_v12 }
 0x3ab   :  { %v1277_v8 = vpop.eup %1276 }
 0x3ac   :  { %v425_v10 = vmul.f32 %v1277_v8, %v1261_v40  ;;  %v417_v14 = vpop.xlane.xlu1 %416  ;;  %v592_v40 = vld [vmem:[#allocation7 + $0x28] sm:$0xff] }
 0x3ad   :  { %v1194_v43 = vpack.c.bf16 %v592_v40, %v591_v39  ;;  %v830_v39 = vld [vmem:[#allocation7 + $0xd0] sm:$0xff]  ;;  %v831_v40 = vld [vmem:[#allocation7 + $0xd8] sm:$0xff] }
 0x3ae   :  { %1107 = vmatprep.mubr.msk.f32.mxu0 %vm351_vm2, %v425_v10 }
 0x3af   :  { %v414_v11 = vpop.xlane.xlu0 %413  ;;  %v1279_v18 = vpop.eup %1278  ;;  %1195 = vmatprep.subr.bf16.mxu1 %v1194_v43 }
 0x3b0   :  { %1284 = vrcp.f32 %v414_v11  ;;  %v427_v20 = vmul.f32 %v1279_v18, %v1263_v47  ;;  %1197 = vmatpush3.bf16.msra.mxu1 %v1194_v43  ;;  %v1198_v47 = vpack.c.bf16 %v594_v46, %v593_v44  ;;  %v1238_v43 = vpack.c.bf16 %v831_v40, %v830_v39  ;;  %v1009_v39 = vld [vmem:[#allocation7 + $0x166] ss:$0 sm:$0xff] }
 0x3b1   :  { %1286 = vrcp.f32 %v417_v14 }
 0x3b2   :  { %v1281_v19 = vpop.eup %1280  ;;  %1199 = vmatprep.subr.bf16.mxu1 %v1198_v47 }
 0x3b3   :  { %v420_v13 = vpop.xlane.xlu0 %419  ;;  %v1283_v21 = vpop.eup %1282  ;;  %v429_v22 = vmul.f32 %v1281_v19, %v1267_v53  ;;  %v820_v19 = vld [vmem:[#allocation7 + $0x80] sm:$0xff] }
 0x3b4   :  { %1288 = vrcp.f32 %v420_v13  ;;  %v431_v25 = vmul.f32 %v1283_v21, %v1265_v52  ;;  %1201 = vmatpush3.bf16.msra.mxu1 %v1198_v47  ;;  %v822_v21 = vld [vmem:[#allocation7 + $0x90] sm:$0xff] }
 0x3b5   :  { %1203 = vmatprep.subr.bf16.mxu1 %v1202_v50 }
 0x3b7   :  { %v1257_v16 = vpop.permute.xlu0 %1256  ;;  %v423_v26 = vpop.xlane.xlu1 %422 }
 0x3b8   :  { %v1259_v17 = vunpack.i.h.bf16 %v1257_v16  ;;  %v1258_v24 = vunpack.i.l.bf16 %v1257_v16  ;;  %1290 = vrcp.f32 %v423_v26  ;;  %v816_v16 = vld [vmem:[#allocation7 + $0x60] sm:$0xff] }
 0x3ba   :  { %v1190_v27 = vpack.c.bf16 %v1259_v17, %v1258_v24  ;;  %v1285_v23 = vpop.eup %1284  ;;  %v817_v17 = vld [vmem:[#allocation7 + $0x68] sm:$0xff]  ;;  %v818_v24 = vld [vmem:[#allocation7 + $0x70] sm:$0xff] }
 0x3bb   :  { %v1287_v28 = vpop.eup %1286  ;;  %v433_v29 = vmul.f32 %v1285_v23, %v1271_v62  ;;  %v1210_v26 = vpack.c.bf16 %v817_v17, %v816_v16  ;;  %v824_v23 = vld [vmem:[#allocation7 + $0xa0] sm:$0xff] }
 0x3bc   :  { %1191 = vmatprep.subr.bf16.mxu0 %v1190_v27  ;;  %v435_v31 = vmul.f32 %v1287_v28, %v1269_v59 }
 0x3bd   :  { %1193 = vmatpush3.bf16.msra.mxu0 %v1190_v27  ;;  %v819_v27 = vld [vmem:[#allocation7 + $0x78] sm:$0xff] }
 0x3be   :  { %v1289_v30 = vpop.eup %1288  ;;  %v1214_v18 = vpack.c.bf16 %v819_v27, %v818_v24  ;;  %1211 = vmatprep.subr.bf16.mxu0 %v1210_v26 }
 0x3bf   :  { %v437_v35 = vmul.f32 %v1289_v30, %v1273_v0  ;;  %v827_v30 = vld [vmem:[#allocation7 + $0xb8] sm:$0xff] }
 0x3c0   :  { %1108 = vmatmul.mubr.msk.f32.vlgmr.msra.gmra.mrb[0].mxu0 %vm351_vm2, %v427_v20  ;;  %v821_v20 = vld [vmem:[#allocation7 + $0x88] sm:$0xff] }
 0x3c1   :  { %1110 = vmatprep.mubr.msk.f32.mxu0 %vm351_vm2, %v429_v22  ;;  %1213 = vmatpush3.bf16.msra.mxu0 %v1210_v26  ;;  %v823_v22 = vld [vmem:[#allocation7 + $0x98] sm:$0xff] }
 0x3c2   :  { %v1291_v32 = vpop.eup %1290  ;;  %1215 = vmatprep.subr.bf16.mxu0 %v1214_v18 }
 0x3c3   :  { %v439_v36 = vmul.f32 %v1291_v32, %v1275_v2  ;;  %v828_v32 = vld [vmem:[#allocation7 + $0xc0] sm:$0xff] }
 0x3c4   :  { %1111 = vmatmul.mubr.msk.f32.gmra.mrb[2].mxu0 %vm351_vm2, %v431_v25  ;;  %v825_v25 = vld [vmem:[#allocation7 + $0xa8] sm:$0xff] }
 0x3c5   :  { %1113 = vmatprep.mubr.msk.f32.mxu0 %vm351_vm2, %v433_v29  ;;  %1217 = vmatpush3.bf16.msra.mxu0 %v1214_v18  ;;  %v1226_v28 = vpack.c.bf16 %v825_v25, %v824_v23  ;;  %v826_v29 = vld [vmem:[#allocation7 + $0xb0] sm:$0xff] }
 0x3c8   :  { %1114 = vmatmul.mubr.msk.f32.gmra.mrb[4].mxu0 %vm351_vm2, %v435_v31  ;;  %v1230_v31 = vpack.c.bf16 %v827_v30, %v826_v29 }
 0x3c9   :  { %1116 = vmatprep.mubr.msk.f32.mxu0 %vm351_vm2, %v437_v35  ;;  %v829_v35 = vld [vmem:[#allocation7 + $0xc8] sm:$0xff] }
 0x3cc   :  { %1117 = vmatmul.mubr.msk.f32.gmra.mrb[6].mxu0 %vm351_vm2, %v439_v36  ;;  %v1234_v36 = vpack.c.bf16 %v829_v35, %v828_v32  ;;  %v1008_v35 = vld [vmem:[#allocation7 + $0x165] ss:$0 sm:$0xff] }
 0x493   :  { %v1109_v51 = vpop.f32.mrb[0].mxu0 }
 0x494   :  { %v538_v52 = vpop.f32.mrb[1].mxu0  ;;  %v578_v54 = vmul.f32 %v1109_v51, %v1509_v33 }
 0x495   :  { %v577_v57 = vmul.f32 %v538_v52, %v1497_v15 }
 0x497   :  { %v1112_v53 = vpop.f32.mrb[2].mxu0 }
 0x498   :  { %v580_v55 = vmul.f32 %v1112_v53, %v1515_v37  ;;  %v548_v56 = vpop.f32.mrb[3].mxu0 }
 0x499   :  { %v579_v58 = vmul.f32 %v548_v56, %v1511_v34  ;;  %v726_v34 = vld [vmem:[#allocation7 + $0x50] sm:$0xff] }
 0x49a   :  { %v586_v59 = vadd.f32 %v580_v55, %v578_v54  ;;  %v1004_v55 = vld [vmem:[#allocation7 + $0x161] ss:$0 sm:$0xff] }
 0x49b   :  { %v585_v60 = vadd.f32 %v579_v58, %v577_v57  ;;  %v1115_v61 = vpop.f32.mrb[4].mxu0 }
 0x49c   :  { %v582_v62 = vmul.f32 %v1115_v61, %v1523_v41  ;;  %v558_v63 = vpop.f32.mrb[5].mxu0  ;;  %v727_v41 = vld [vmem:[#allocation7 + $0x58] sm:$0xff] }
 0x49d   :  { %v581_v0 = vmul.f32 %v558_v63, %v1518_v38  ;;  %v1206_v8 = vpack.c.bf16 %v727_v41, %v726_v34  ;;  %v999_v38 = vld [vmem:[#allocation7 + $0x162] ss:$0 sm:$0xff]  ;;  %v1007_v41 = vld [vmem:[#allocation7 + $0x167] ss:$0 sm:$0xff] }
 0x49e   :  { %v588_v1 = vadd.f32 %v586_v59, %v582_v62 }
 0x49f   :  { %v587_v2 = vadd.f32 %v585_v60, %v581_v0  ;;  %v1118_v3 = vpop.f32.mrb[6].mxu0 }
 0x4a0   :  { %v584_v33 = vmul.f32 %v1118_v3, %v1531_v45  ;;  %v568_v4 = vpop.f32.mrb[7].mxu0 }
 0x4a1   :  { %v583_v37 = vmul.f32 %v568_v4, %v1526_v42 }
 0x4a2   :  { %v590_v6 = vadd.f32 %v588_v1, %v584_v33 }
 0x4a3   :  { %v589_v15 = vadd.f32 %v587_v2, %v583_v37 }
 0x4a5   :  { %1127 = vmatprep.mubr.msk.f32.mxu1 %vm74_vm0, %v589_v15 }
 0x4a6   :  { %1128 = vmatmul.mubr.msk.f32.vlgmr.msra.gmra.mrb[14].mxu1 %vm74_vm0, %v590_v6  ;;  %v1002_v6 = vld [vmem:[#allocation7 + $0x163] ss:$0 sm:$0xff] }
 0x4a7   :  { %1205 = vmatpush3.bf16.msra.mxu1 %v1202_v50 }
 0x4a8   :  { %1207 = vmatprep.subr.bf16.mxu1 %v1206_v8 }
 0x4ab   :  { %1209 = vmatpush3.bf16.msra.mxu1 %v1206_v8  ;;  %v1003_v8 = vld [vmem:[#allocation7 + $0x164] ss:$0 sm:$0xff] }
 0x579   :  { %v1129_v9 = vpop.f32.mrb[14].mxu1 }
 0x57a   :  { %v672_v10 = vpop.f32.mrb[15].mxu1  ;;  %v678_v11 = vadd.f32 %v1129_v9, %v999_v38 }
 0x57b   :  { %v673_v45 = vadd.f32 %v999_v38, %v672_v10 }
 0x57c   :  { %v684_v13 = vadd.f32 %v678_v11, %v1483_v7  ;;  %v1222_v7 = vpack.c.bf16 %v823_v22, %v822_v21 }
 0x57d   :  { %1138 = vmatprep.mubr.msk.f32.mxu1 %vm74_vm0, %v673_v45  ;;  %v683_v42 = vadd.f32 %v673_v45, %v1479_v5  ;;  %v1218_v5 = vpack.c.bf16 %v821_v20, %v820_v19 }
 0x57e   :  { %1139 = vmatmul.mubr.msk.f32.vlgmr.msra.gmra.mrb[16].mxu1 %vm74_vm0, %v678_v11  ;;  %v688_v14 = vsel %vm74_vm0, %v684_v13, 0.0 }
 0x57f   :  { %v685_v12 = vsel %vm74_vm0, %v683_v42, 0.0  ;;  %1219 = vmatprep.subr.bf16.mxu0 %v1218_v5 }
 0x580   :  { %686 = vadd.xlane.f32.xlu1 %v685_v12  ;;  %1221 = vmatpush3.bf16.msra.mxu0 %v1218_v5 }
 0x581   :  { %1223 = vmatprep.subr.bf16.mxu0 %v1222_v7 }
 0x584   :  { %689 = vadd.xlane.f32.xlu1 %v688_v14  ;;  %1225 = vmatpush3.bf16.msra.mxu0 %v1222_v7 }
 0x585   :  { %1227 = vmatprep.subr.bf16.mxu0 %v1226_v28 }
 0x588   :  { %1229 = vmatpush3.bf16.msra.mxu0 %v1226_v28 }
 0x589   :  { %1231 = vmatprep.subr.bf16.mxu0 %v1230_v31 }
 0x58c   :  { %1233 = vmatpush3.bf16.msra.mxu0 %v1230_v31 }
 0x58d   :  { %1235 = vmatprep.subr.bf16.mxu0 %v1234_v36 }
 0x590   :  { %1237 = vmatpush3.bf16.msra.mxu0 %v1234_v36 }
 0x591   :  { %1239 = vmatprep.subr.bf16.mxu0 %v1238_v43 }
 0x594   :  { %1241 = vmatpush3.bf16.msra.mxu0 %v1238_v43 }
 0x60d   :  { %v687_v44 = vpop.xlane.xlu1 %686 }
 0x60e   :  { %v692_v46 = vmul.f32 0.03125, %v687_v44 }
 0x610   :  { %v694_v47 = vsub.f32 %v683_v42, %v692_v46 }
 0x611   :  { %v690_v48 = vpop.xlane.xlu1 %689 }
 0x612   :  { %v693_v49 = vmul.f32 0.03125, %v690_v48  ;;  %v696_v50 = vmul.f32 %v694_v47, %v694_v47 }
 0x614   :  { %v695_v51 = vsub.f32 %v684_v13, %v693_v49  ;;  %v698_v52 = vsel %vm74_vm0, %v696_v50, 0.0 }
 0x615   :  { %699 = vadd.xlane.f32.xlu1 %v698_v52 }
 0x616   :  { %v697_v53 = vmul.f32 %v695_v51, %v695_v51 }
 0x618   :  { %v701_v54 = vsel %vm74_vm0, %v697_v53, 0.0 }
 0x619   :  { %702 = vadd.xlane.f32.xlu1 %v701_v54 }
 0x651   :  { %v1140_v56 = vpop.f32.mrb[16].mxu1 }
 0x652   :  { %v811_v57 = vadd.f32 %v1140_v56, %v1004_v55  ;;  %v805_v58 = vpop.f32.mrb[17].mxu1 }
 0x653   :  { %v806_v59 = vadd.f32 %v1004_v55, %v805_v58 }
 0x654   :  { %v815_v61 = vmax.f32 %v811_v57, 0.0 }
 0x655   :  { %v814_v60 = vmax.f32 %v806_v59, 0.0 }
 0x657   :  { %1173 = vmatprep.mubr.f32.mxu0 %v814_v60 }
 0x658   :  { %1174 = vmatmul.mubr.f32.vlgmr.msra.gmra.mrb[8].mxu0 %v815_v61 }
 0x6a2   :  { %v700_v62 = vpop.xlane.xlu1 %699 }
 0x6a3   :  { %v704_v0 = vmul.f32 0.03125, %v700_v62 }
 0x6a5   :  { %v706_v2 = vadd.f32 1e-05, %v704_v0 }
 0x6a6   :  { %v703_v63 = vpop.xlane.xlu1 %702 }
 0x6a7   :  { %v705_v1 = vmul.f32 0.03125, %v703_v63  ;;  %1292 = vrsqrt.f32 %v706_v2 }
 0x6a9   :  { %v707_v3 = vadd.f32 1e-05, %v705_v1 }
 0x6ab   :  { %1294 = vrsqrt.f32 %v707_v3 }
 0x6b1   :  { %v1293_v33 = vpop.eup %1292 }
 0x6b2   :  { %v710_v37 = vmul.f32 %v1293_v33, %v694_v47 }
 0x6b4   :  { %v716_v34 = vmul.f32 %v1002_v6, %v710_v37 }
 0x6b5   :  { %v1295_v4 = vpop.eup %1294 }
 0x6b6   :  { %v711_v15 = vmul.f32 %v1295_v4, %v695_v51  ;;  %v722_v42 = vadd.f32 %v1003_v8, %v716_v34 }
 0x6b8   :  { %v717_v9 = vmul.f32 %v1002_v6, %v711_v15 }
 0x6ba   :  { %v723_v13 = vadd.f32 %v1003_v8, %v717_v9 }
 0x72b   :  { %v1175_v38 = vpop.f32.mrb[8].mxu0 }
 0x72c   :  { %v903_v10 = vpop.f32.mrb[9].mxu0  ;;  %v909_v11 = vadd.f32 %v1175_v38, %v1007_v41 }
 0x72d   :  { %v904_v45 = vadd.f32 %v1007_v41, %v903_v10 }
 0x72e   :  { %v915_v16 = vadd.f32 %v909_v11, %v723_v13 }
 0x72f   :  { %v914_v12 = vadd.f32 %v904_v45, %v722_v42 }
 0x730   :  { %v919_v17 = vsel %vm74_vm0, %v915_v16, 0.0 }
 0x731   :  { %v916_v14 = vsel %vm74_vm0, %v914_v12, 0.0 }
 0x732   :  { %917 = vadd.xlane.f32.xlu1 %v916_v14 }
 0x736   :  { %920 = vadd.xlane.f32.xlu1 %v919_v17 }
 0x7bf   :  { %v918_v24 = vpop.xlane.xlu1 %917 }
 0x7c0   :  { %v922_v26 = vmul.f32 0.03125, %v918_v24 }
 0x7c2   :  { %v924_v27 = vsub.f32 %v914_v12, %v922_v26 }
 0x7c3   :  { %v921_v18 = vpop.xlane.xlu1 %920 }
 0x7c4   :  { %v923_v19 = vmul.f32 0.03125, %v921_v18  ;;  %v926_v20 = vmul.f32 %v924_v27, %v924_v27 }
 0x7c6   :  { %v925_v5 = vsub.f32 %v915_v16, %v923_v19  ;;  %v928_v21 = vsel %vm74_vm0, %v926_v20, 0.0 }
 0x7c7   :  { %929 = vadd.xlane.f32.xlu0 %v928_v21 }
 0x7c8   :  { %v927_v22 = vmul.f32 %v925_v5, %v925_v5 }
 0x7ca   :  { %v931_v7 = vsel %vm74_vm0, %v927_v22, 0.0 }
 0x7cb   :  { %932 = vadd.xlane.f32.xlu1 %v931_v7 }
 0x854   :  { %v930_v23 = vpop.xlane.xlu0 %929 }
 0x855   :  { %v934_v25 = vmul.f32 0.03125, %v930_v23 }
 0x857   :  { %v936_v28 = vadd.f32 1e-05, %v934_v25 }
 0x858   :  { %v933_v29 = vpop.xlane.xlu1 %932 }
 0x859   :  { %1296 = vrsqrt.f32 %v936_v28  ;;  %v935_v30 = vmul.f32 0.03125, %v933_v29 }
 0x85b   :  { %v937_v31 = vadd.f32 1e-05, %v935_v30 }
 0x85d   :  { %1298 = vrsqrt.f32 %v937_v31 }
 0x863   :  { %v1297_v32 = vpop.eup %1296 }
 0x864   :  { %v940_v36 = vmul.f32 %v1297_v32, %v924_v27 }
 0x866   :  { %v946_v40 = vmul.f32 %v1008_v35, %v940_v36 }
 0x867   :  { %v1299_v43 = vpop.eup %1298 }
 0x868   :  { %v941_v44 = vmul.f32 %v1299_v43, %v925_v5  ;;  %v952_v46 = vadd.f32 %v1009_v39, %v946_v40 }
 0x86a   :  { %v947_v47 = vmul.f32 %v1008_v35, %v941_v44  ;;  %954 = vst.msk [vmem:[#allocation8] sm:$0xff] %vm74_vm0, %v952_v46 }
 0x86c   :  { %v953_v48 = vadd.f32 %v1009_v39, %v947_v47 }
 0x86e   :  { %955 = vst.msk [vmem:[#allocation8 + $0x8] sm:$0xff] %vm74_vm0, %v953_v48 }
 0x86f   :  { %1377 = shalt.err (!%p1374_p0)
}
 0x870   :  { %s1378_s10 = scalar_lea.hbm %s1607_s4, 256 }
 0x871   :  { %p1379_p1 = scmp.ne.s32.totalorder %s1607_s4, %s1378_s10  ;;  %p1382_p2 = scmp.lt.u32.totalorder %s1378_s10, %s1607_s4 }
 0x873   :  { %p1384_p3 = pnand %p1382_p2, %p1379_p1 }
 0x875   :  { %1387 = shalt.err (!%p1384_p3)
}
 0x876   :  { %967 = dma.vmem_to_hbm [thread:$0]  %s962_s6, 256, %s1607_s4, [#allocation4], %s1396_s27, %s1396_s27, %s1397_s28  }
 0x877   :  { %1392 = dma.done.wait [#allocation4], 256  }
 0x878   :  { %1393 = vsyncadd [#allocation4], 4294967040 }
 0x879   :  { %971 = vsyncpa [#allocation3], 1 }
 0x87a   :  { %972 = vsyncpa [#allocation6], 1 }
 0x87b   :  { %973 = vsyncpa [#allocation4], 1 }

</bundles_post_ra>
